<compile_context>
chip_gen: v7x
topology: tpu7x:2x2x1
jax: 0.10.0
libtpu: 0.0.40
codegen_flags: <defaults>
</compile_context>

<pallas_src>
import jax
import jax.numpy as jnp
import numpy as np
from jax.experimental import pallas as pl
from jax.experimental.pallas import tpu as pltpu


def _round_up(x, m):
    return (x + m - 1) // m * m


# -----------------------------------------------------------------------------
# Expert-FFN kernel over the sorted (expert-major, tile-aligned) token buffer.
# grid = (num_row_tiles,), scalar-prefetched tile_expert[t] selects the weights.
#   h   = x_tile @ W_in[e]            (TM, 2Fp)   bf16 x bf16 -> f32
#   a   = silu(h[:, :Fp]) * h[:, Fp:]
#   y   = a @ W_out[e]                (TM, Hp)    bf16 x bf16 -> f32
#   out = gate[:, None] * y           (written once per tile, f32)
# -----------------------------------------------------------------------------
def _moe_kernel(te_ref, x_ref, g_ref, w_in_ref, w_out_ref, o_ref):
    del te_ref  # only used in index maps
    x = x_ref[...]                                        # (TM, Hp)  bf16
    w_in = w_in_ref[...]                                  # (Hp, 2Fp) bf16
    w_out = w_out_ref[...]                                # (Fp, Hp)  bf16

    h = jnp.dot(x, w_in, preferred_element_type=jnp.float32)        # (TM, 2Fp)
    fp = h.shape[-1] // 2
    act = (jax.nn.silu(h[:, :fp]) * h[:, fp:]).astype(x.dtype)      # (TM, Fp)
    y = jnp.dot(act, w_out, preferred_element_type=jnp.float32)     # (TM, Hp)

    o_ref[...] = g_ref[...] * y                           # gate-weighted, f32


def _compute_vmem_limit(tm, hp, two_fp, fp):
    """Per-block VMEM estimate (double-buffered ins/outs + temporaries)."""
    bf16, f32 = 2, 4
    blk = (
        2 * (tm * hp * bf16)          # x tile
        + 2 * (tm * 1 * f32)          # gate column
        + 2 * (hp * two_fp * bf16)    # W_in[e]
        + 2 * (fp * hp * bf16)        # W_out[e]
        + 2 * (tm * hp * f32)         # out tile
        + tm * two_fp * f32           # h temporary
        + tm * fp * bf16              # act temporary
    )
    blk = int(blk * 1.25) + (2 << 20)
    try:
        cap = pltpu.get_tpu_info().vmem_capacity_bytes
    except Exception:
        cap = 64 << 20                # conservative (v7x per-TC)
    return max(16 << 20, min(blk, int(cap * 0.9)))


def moe_experts_sorted(x_sorted, gates_sorted, tile_expert, w_in_p, w_out_p, *, tm):
    """x_sorted: (S, Hp) bf16, gates_sorted: (S, 1) f32, tile_expert: (S//tm,) i32,
    w_in_p: (E, Hp, 2Fp) bf16, w_out_p: (E, Fp, Hp) bf16.  Returns (S, Hp) f32."""
    s, hp = x_sorted.shape
    e, _, two_fp = w_in_p.shape
    fp = two_fp // 2
    assert s % tm == 0
    num_tiles = s // tm

    return pl.pallas_call(
        _moe_kernel,
        out_shape=jax.ShapeDtypeStruct((s, hp), jnp.float32),
        grid_spec=pltpu.PrefetchScalarGridSpec(
            num_scalar_prefetch=1,
            grid=(num_tiles,),
            in_specs=[
                pl.BlockSpec((tm, hp), lambda t, te: (t, 0)),              # x tile
                pl.BlockSpec((tm, 1), lambda t, te: (t, 0)),               # gates
                pl.BlockSpec((None, hp, two_fp), lambda t, te: (te[t], 0, 0)),  # W_in[e]
                pl.BlockSpec((None, fp, hp), lambda t, te: (te[t], 0, 0)),      # W_out[e]
            ],
            out_specs=pl.BlockSpec((tm, hp), lambda t, te: (t, 0)),
        ),
        compiler_params=pltpu.CompilerParams(
            dimension_semantics=("parallel",),
            vmem_limit_bytes=_compute_vmem_limit(tm, hp, two_fp, fp),
        ),
    )(tile_expert, x_sorted, gates_sorted, w_in_p, w_out_p)


# -----------------------------------------------------------------------------
# One-time weight preparation (layout plumbing; do at parameter-load time).
#   input_linear.weight  : (E, 2F, H) -> (E, Hp, 2Fp)   [gate | up halves padded]
#   output_linear.weight : (E, H, F)  -> (E, Fp, Hp)
# -----------------------------------------------------------------------------
def prepare_expert_weights(w_in, w_out, hp, fp):
    e, two_f, h = w_in.shape
    f = two_f // 2
    w_in_t = jnp.transpose(w_in, (0, 2, 1))                     # (E, H, 2F)
    gate_w = jnp.pad(w_in_t[:, :, :f], ((0, 0), (0, hp - h), (0, fp - f)))
    up_w = jnp.pad(w_in_t[:, :, f:], ((0, 0), (0, hp - h), (0, fp - f)))
    w_in_p = jnp.concatenate([gate_w, up_w], axis=-1).astype(jnp.bfloat16)

    w_out_t = jnp.transpose(w_out, (0, 2, 1))                   # (E, F, H)
    w_out_p = jnp.pad(w_out_t, ((0, 0), (0, fp - f), (0, hp - h))).astype(jnp.bfloat16)
    return w_in_p, w_out_p


# -----------------------------------------------------------------------------
# Full GraniteMoeMoE forward.
# -----------------------------------------------------------------------------
def granite_moe_forward(layer_input, params, top_k, *, tm=256):
    """layer_input: (bsz, length, hidden). Returns (layer_output, router_logits)."""
    bsz, length, emb = layer_input.shape
    x = layer_input.reshape(-1, emb).astype(jnp.float32)          # (N, H)
    n, h = x.shape
    e_num, two_f, _ = params["w_in"].shape
    f = two_f // 2

    hp = _round_up(h, 128)
    fp = _round_up(f, 128)

    # --- router: tiny GEMM + top_k/softmax, left to XLA (per perf review) ---
    logits = jnp.dot(x, params["router"].astype(jnp.float32).T)   # (N, E) f32
    topk_vals, topk_idx = jax.lax.top_k(logits, top_k)            # (N, K)
    topk_gates = jax.nn.softmax(topk_vals, axis=-1)               # (N, K) f32

    # --- sorted / ragged dispatch (expert-major, tile-aligned segments) ---
    nk = n * top_k
    expert_ids = topk_idx.reshape(-1).astype(jnp.int32)           # (NK,)
    token_ids = (jnp.arange(nk, dtype=jnp.int32) // top_k)        # (NK,)
    gates_flat = topk_gates.reshape(-1)

    sort_idx = jnp.argsort(expert_ids)                            # stable
    sorted_expert = expert_ids[sort_idx]
    sorted_token = token_ids[sort_idx]
    sorted_gate = gates_flat[sort_idx]

    sizes = jnp.bincount(expert_ids, length=e_num)                # (E,)
    group_start = jnp.cumsum(sizes) - sizes
    padded_sizes = ((sizes + tm - 1) // tm) * tm                  # tile-aligned
    cum_padded = jnp.cumsum(padded_sizes)
    padded_offsets = cum_padded - padded_sizes

    # static buffer: sum_e round_up(size_e, tm) <= round_up(NK, tm) + E*tm
    s_static = _round_up(nk, tm) + e_num * tm
    num_tiles = s_static // tm

    pos_in_group = jnp.arange(nk, dtype=jnp.int32) - group_start[sorted_expert]
    dest = padded_offsets[sorted_expert] + pos_in_group           # (NK,)

    x_pad = jnp.pad(x, ((0, 0), (0, hp - h)))
    x_sorted = jnp.zeros((s_static, hp), jnp.bfloat16).at[dest].set(
        x_pad[sorted_token].astype(jnp.bfloat16))
    gates_sorted = jnp.zeros((s_static, 1), jnp.float32).at[dest].set(
        sorted_gate[:, None])
    dest_token = jnp.full((s_static,), n, jnp.int32).at[dest].set(sorted_token)

    # per-tile expert id (scalar-prefetch array); trailing padding tiles reuse
    # the last used expert to avoid a pointless weight DMA (their gates are 0).
    tile_start = jnp.arange(num_tiles, dtype=jnp.int32) * tm
    te = jnp.searchsorted(cum_padded, tile_start, side="right")
    tile_expert = jnp.where(te >= e_num, sorted_expert[-1], te).astype(jnp.int32)

    # weight layout prep (once per call here; cache at load time in a real model)
    w_in_p, w_out_p = prepare_expert_weights(params["w_in"], params["w_out"], hp, fp)

    # --- Pallas expert FFN over sorted tokens ---
    out_sorted = moe_experts_sorted(x_sorted, gates_sorted, tile_expert,
                                    w_in_p, w_out_p, tm=tm)        # (S, Hp) f32

    # --- combine: scatter-add gate-weighted expert outputs back to tokens ---
    out = jnp.zeros((n + 1, hp), jnp.float32).at[dest_token].add(out_sorted)
    out = out[:n, :h]
    return out.reshape(bsz, length, emb), logits


# -----------------------------------------------------------------------------
# Pure-JAX reference mirroring the PyTorch module math (f32 throughout).
# -----------------------------------------------------------------------------
def granite_moe_reference(layer_input, params, top_k):
    bsz, length, emb = layer_input.shape
    x = layer_input.reshape(-1, emb).astype(jnp.float32)
    logits = jnp.dot(x, params["router"].astype(jnp.float32).T)
    topk_vals, topk_idx = jax.lax.top_k(logits, top_k)
    gates = jax.nn.softmax(topk_vals, axis=-1)                    # (N, K)

    w_in = params["w_in"].astype(jnp.float32)                     # (E, 2F, H)
    w_out = params["w_out"].astype(jnp.float32)                   # (E, H, F)
    f = w_in.shape[1] // 2

    out = jnp.zeros_like(x)
    for k in range(top_k):
        e = topk_idx[:, k]
        h = jnp.einsum("nh,nfh->nf", x, w_in[e])                  # (N, 2F)
        a = jax.nn.silu(h[:, :f]) * h[:, f:]
        y = jnp.einsum("nf,nhf->nh", a, w_out[e])                 # (N, H)
        out = out + gates[:, k:k + 1] * y
    return out.reshape(bsz, length, emb), logits


if __name__ == "__main__":
    # small config: hidden=64, intermediate=128, 8 experts, top_k=2, bsz=2, seq=8
    hidden_size = 64
    intermediate_size = 128
    num_experts = 8
    top_k = 2
    bsz, seq = 2, 8

    key = jax.random.PRNGKey(0)
    k_x, k_r, k_in, k_out = jax.random.split(key, 4)

    layer_input = jax.random.normal(k_x, (bsz, seq, hidden_size), jnp.float32)
    params = {
        # router.layer.weight : (num_experts, hidden_size)
        "router": 0.02 * jax.random.normal(k_r, (num_experts, hidden_size), jnp.float32),
        # input_linear.weight : (num_experts, 2*intermediate, hidden)
        "w_in": 0.02 * jax.random.normal(
            k_in, (num_experts, 2 * intermediate_size, hidden_size), jnp.float32),
        # output_linear.weight: (num_experts, hidden, intermediate)
        "w_out": 0.02 * jax.random.normal(
            k_out, (num_experts, hidden_size, intermediate_size), jnp.float32),
    }

    out, logits = granite_moe_forward(layer_input, params, top_k)
    out = jax.block_until_ready(out)
    logits = jax.block_until_ready(logits)

    ref_out, ref_logits = granite_moe_reference(layer_input, params, top_k)
    # router path is identical f32 math -> tight tolerance
    np.testing.assert_allclose(np.asarray(logits), np.asarray(ref_logits),
                               rtol=1e-5, atol=1e-6)
    # expert path uses bf16 matmul operands (f32 accumulation) -> looser tolerance
    np.testing.assert_allclose(np.asarray(out), np.asarray(ref_out),
                               rtol=2e-2, atol=1e-2)

    print("KERNEL_OK")
</pallas_src>

<mosaic_0001>
module attributes {stable_mosaic.version = 11 : i64} {
  func.func @_moe_kernel(%arg0: i32, %arg1: memref<9xi32, #tpu.memory_space<smem>>, %arg2: memref<256x128xbf16, #tpu.memory_space<vmem>>, %arg3: memref<256x1xf32, #tpu.memory_space<vmem>>, %arg4: memref<1x128x256xbf16, #tpu.memory_space<vmem>>, %arg5: memref<1x128x128xbf16, #tpu.memory_space<vmem>>, %arg6: memref<256x128xf32, #tpu.memory_space<vmem>>) attributes {dimension_semantics = [#tpu.dimension_semantics<parallel>], iteration_bounds = array<i64: 9>, scalar_prefetch = 1 : i64, scratch_operands = 0 : i64, tpu.core_type = #tpu.core_type<tc>, window_params = [{transform_indices = @transform_0, window_bounds = array<i64: 256, 128>}, {transform_indices = @transform_1, window_bounds = array<i64: 256, 1>}, {transform_indices = @transform_2, window_bounds = array<i64: 1, 128, 256>}, {transform_indices = @transform_3, window_bounds = array<i64: 1, 128, 128>}, {transform_indices = @transform_4, window_bounds = array<i64: 256, 128>}]} {
    %c0 = arith.constant 0 : index
    %c0_0 = arith.constant 0 : index
    %0 = vector.load %arg2[%c0, %c0_0] : memref<256x128xbf16, #tpu.memory_space<vmem>>, vector<256x128xbf16>
    %c0_1 = arith.constant 0 : index
    %c0_2 = arith.constant 0 : index
    %c0_3 = arith.constant 0 : index
    %1 = vector.load %arg4[%c0_1, %c0_2, %c0_3] : memref<1x128x256xbf16, #tpu.memory_space<vmem>>, vector<1x128x256xbf16>
    %2 = vector.shape_cast %1 : vector<1x128x256xbf16> to vector<128x256xbf16>
    %c0_4 = arith.constant 0 : index
    %c0_5 = arith.constant 0 : index
    %c0_6 = arith.constant 0 : index
    %3 = vector.load %arg5[%c0_4, %c0_5, %c0_6] : memref<1x128x128xbf16, #tpu.memory_space<vmem>>, vector<1x128x128xbf16>
    %4 = vector.shape_cast %3 : vector<1x128x128xbf16> to vector<128x128xbf16>
    %cst = arith.constant dense<0.000000e+00> : vector<256x256xf32>
    %5 = tpu.matmul %0, %2, %cst {dimension_numbers = #tpu.dot_dimension_numbers<[1], [0], [0], [1], [0, 0, 1, 1], [], []>} : vector<256x128xbf16>, vector<128x256xbf16>, vector<256x256xf32> -> vector<256x256xf32>
    %6 = vector.extract_strided_slice %5 {offsets = [0, 0], sizes = [256, 128], strides = [1, 1]} : vector<256x256xf32> to vector<256x128xf32>
    %7 = arith.negf %6 : vector<256x128xf32>
    %8 = math.exp %7 : vector<256x128xf32>
    %cst_7 = arith.constant 1.000000e+00 : f32
    %9 = vector.broadcast %cst_7 : f32 to vector<256x128xf32>
    %10 = arith.addf %9, %8 : vector<256x128xf32>
    %11 = arith.divf %9, %10 : vector<256x128xf32>
    %12 = arith.mulf %6, %11 : vector<256x128xf32>
    %13 = vector.extract_strided_slice %5 {offsets = [0, 128], sizes = [256, 128], strides = [1, 1]} : vector<256x256xf32> to vector<256x128xf32>
    %14 = arith.mulf %12, %13 : vector<256x128xf32>
    %15 = arith.truncf %14 : vector<256x128xf32> to vector<256x128xbf16>
    %cst_8 = arith.constant dense<0.000000e+00> : vector<256x128xf32>
    %16 = tpu.matmul %15, %4, %cst_8 {dimension_numbers = #tpu.dot_dimension_numbers<[1], [0], [0], [1], [0, 0, 1, 1], [], []>} : vector<256x128xbf16>, vector<128x128xbf16>, vector<256x128xf32> -> vector<256x128xf32>
    %c0_9 = arith.constant 0 : index
    %c0_10 = arith.constant 0 : index
    %17 = vector.load %arg3[%c0_9, %c0_10] : memref<256x1xf32, #tpu.memory_space<vmem>>, vector<256x1xf32>
    %18 = vector.broadcast %17 : vector<256x1xf32> to vector<256x128xf32>
    %19 = arith.mulf %18, %16 : vector<256x128xf32>
    %c0_11 = arith.constant 0 : index
    %c0_12 = arith.constant 0 : index
    %20 = vector.load %arg6[%c0_11, %c0_12] : memref<256x128xf32, #tpu.memory_space<vmem>>, vector<256x128xf32>
    tpu.vector_store %arg6[%c0_11, %c0_12], %19 {strides = array<i32>} : memref<256x128xf32, #tpu.memory_space<vmem>>, vector<256x128xf32>,
    return
  }
  func.func @transform_0(%arg0: i32, %arg1: memref<9xi32, #tpu.memory_space<smem>>) -> (i32, i32) {
    %c0_i32 = arith.constant 0 : i32
    %c0_i32_0 = arith.constant 0 : i32
    return %arg0, %c0_i32 : i32, i32
  }
  func.func @transform_1(%arg0: i32, %arg1: memref<9xi32, #tpu.memory_space<smem>>) -> (i32, i32) {
    %c0_i32 = arith.constant 0 : i32
    %c0_i32_0 = arith.constant 0 : i32
    return %arg0, %c0_i32 : i32, i32
  }
  func.func @transform_2(%arg0: i32, %arg1: memref<9xi32, #tpu.memory_space<smem>>) -> (i32, i32, i32) {
    %0 = arith.index_cast %arg0 : i32 to index
    %1 = memref.load %arg1[%0] : memref<9xi32, #tpu.memory_space<smem>>
    %c0_i32 = arith.constant 0 : i32
    %c0_i32_0 = arith.constant 0 : i32
    %c0_i32_1 = arith.constant 0 : i32
    return %1, %c0_i32, %c0_i32_0 : i32, i32, i32
  }
  func.func @transform_3(%arg0: i32, %arg1: memref<9xi32, #tpu.memory_space<smem>>) -> (i32, i32, i32) {
    %0 = arith.index_cast %arg0 : i32 to index
    %1 = memref.load %arg1[%0] : memref<9xi32, #tpu.memory_space<smem>>
    %c0_i32 = arith.constant 0 : i32
    %c0_i32_0 = arith.constant 0 : i32
    %c0_i32_1 = arith.constant 0 : i32
    return %1, %c0_i32, %c0_i32_0 : i32, i32, i32
  }
  func.func @transform_4(%arg0: i32, %arg1: memref<9xi32, #tpu.memory_space<smem>>) -> (i32, i32) {
    %c0_i32 = arith.constant 0 : i32
    %c0_i32_0 = arith.constant 0 : i32
    return %arg0, %c0_i32 : i32, i32
  }
}

</mosaic_0001>

<bundles_post_ra>
// kernel: tpu_custom_call.1
= control target key start
LH: loop header
LB: loop body
LE: loop exit
PB: predicated region body
PF: predicated region fallthrough
CT: control target
= control target key end

     0   :  { %s2793_s0 = inlined_call_operand.vmem [shape: s32[9], index: 0, kind: input, shape index: {}]   ;;  %s2794_s1 = inlined_call_operand.vmem [shape: bf16[2304,128], index: 1, kind: input, shape index: {}]   ;;  %s2795_s2 = inlined_call_operand.vmem [shape: f32[2304,1], index: 2, kind: input, shape index: {}]   ;;  %s2796_s3 = inlined_call_operand.vmem [shape: bf16[8,128,256], index: 3, kind: input, shape index: {}]   ;;  %s2797_s4 = inlined_call_operand.hbm [shape: bf16[8,128,128], index: 4, kind: input, shape index: {}]   ;;  %s2798_s5 = inlined_call_operand.hbm [shape: f32[2304,128], index: 5, kind: output, shape index: {}]  }
   0x1   :  { %s10_s20 = sshll.u32 %s2793_s0, 4  ;;  %s11_s20 = int_to_ptr.vmem [resolvable:$true] %s10_s20 }
   0x2   :  { %s2034_s21 = scalar_lea.vmem %s11_s20, 16  ;;  %p2039_p1 = scmp.lt.s32.totalorder %s11_s20, %s11_s20 }
   0x3   :  { %p2035_p0 = scmp.ne.s32.totalorder %s11_s20, %s2034_s21  ;;  %p2040_p2 = scmp.lt.s32.totalorder %s2034_s21, %s2034_s21 }
   0x5   :  { %p2041_p3 = por %p2040_p2, %p2039_p1 }
   0x7   :  { %p2042_p4 = pnand %p2041_p3, %p2035_p0 }
   0x9   :  { %2045 = shalt.err (!%p2042_p4)  }
   0xa   :  { %s2170_s22 = smov [#allocation3]  }
   0xb   :  { %13 = dma.vmem_to_smem %s11_s20, 16, %s2170_s22, [#allocation2] }
   0xc   :  { %2132 = dma.done.wait [#allocation2], 16 }
   0xd   :  { %2133 = vsyncadd [#allocation2], 4294967280 }
   0xe   :  { %15 = sfence }
   0xf   :  { %16 = vsyncpa [#allocation5], 0 }
  0x10   :  { %18 = vsyncpa [#allocation5 + $0x1], 0 }
  0x11   :  { %19 = vsyncpa [#allocation6], 0 }
  0x12   :  { %21 = vsyncpa [#allocation6 + $0x1], 0  ;;  %s2211_s23 = smov 0   ;;  %s2213_s0 = smov 0  }
  0x13   :  { %s2215_s24 = smov 0   ;;  %s2217_s25 = smov 0  }
  0x14   :  { %s2219_s26 = smov 0   ;;  %s2221_s27 = smov 0  }
  0x15   :  { %s2223_s28 = smov 0  }
  0x16 LB: > { %s2245_s29 = sadd.s32 4294967295, %s2168_s28   ;;  %s1593_s30 = sadd.s32 4294967294, %s2168_s28   ;;  %s2168_s28 = sphi %s2223_s28, %s2816_s28   ;;  %s2164_s27 = sphi %s2221_s27, %s2815_s27   ;;  %s2160_s26 = sphi %s2219_s26, %s2814_s26   ;;  %s2156_s25 = sphi %s2217_s25, %s2813_s25   ;;  %s2152_s24 = sphi %s2215_s24, %s2812_s24   ;;  %s2148_s0 = sphi %s2213_s0, %s2811_s0   ;;  %s2144_s23 = sphi %s2211_s23, %s2810_s23  }
  0x17   : > { %s2249_s6 = sadd.s32 1, %s2168_s28   ;;  %s111_s7 = sld [smem:[#allocation3 + %s2168_s28]] }
  0x18   : > { %s112_s8 = sld [smem:[#allocation3 + %s2249_s6]]  ;;  %s116_s9 = sadd.s32 1, %s2164_s27 }
  0x19   : > { %p123_p5 = scmp.ne.s32.totalorder %s2164_s27, %s2160_s26  ;;  %p124_p6 = scmp.eq.s32.totalorder %s2168_s28, 0 }
  0x1a   : > { %p129_p7 = scmp.ne.s32.totalorder %s2160_s26, %s2156_s25  ;;  %p130_p8 = scmp.eq.s32.totalorder %s2245_s29, 0 }
  0x1b   : > { %p2259_p9 = por %p124_p6, %p123_p5  ;;  %s139_s11 = ssub.s32 %s2168_s28, %s2249_s6 }
  0x1c   : > { %p2265_p10 = por %p130_p8, %p129_p7  ;;  %p140_p11 = scmp.eq.s32.totalorder %s139_s11, 0 }
  0x1d   : > { %s142_s13 = sadd.s32 1, %s2152_s24  ;;  %p152_p12 = scmp.ne.s32.totalorder %s2152_s24, %s2148_s0 }
  0x1e   : > { %s2802_s12 = scalar_select %p2265_p10, 1, 0 }
  0x1f   : > { %s113_s14 = ssub.s32 %s111_s7, %s112_s8  ;;  %p153_p13 = scmp.eq.s32.totalorder %s2245_s29, 8 }
  0x20   : > { %p114_p0 = scmp.eq.s32.totalorder %s113_s14, 0  ;;  %p158_p1 = scmp.ne.s32.totalorder %s2148_s0, %s2144_s23 }
  0x21   : > { %s2276_s15 = scalar_select %p140_p11, %s2152_s24, %s142_s13  }
  0x22   : > { %s2279_s16 = scalar_select %p114_p0, %s2164_s27, %s116_s9  }
  0x23   : > { %p2281_p2 = por %p153_p13, %p152_p12  ;;  %p159_p3 = scmp.eq.s32.totalorder %s1593_s30, 8 }
  0x24   : > { %p1792_p4 = scmp.lt.s32.totalorder %s2168_s28, 9  ;;  %s207_s19 = sand.u32 1, %s2164_s27  }
  0x25   : > { %s2803_s17 = scalar_select %p2281_p2, 1, 0 }
  0x26   : > { %p2286_p5 = por %p159_p3, %p158_p1  ;;  %s1596_s20 = sshll.u32 %s207_s19, 6 }
  0x27   : > { %p2293_p6 = pnand %p1792_p4, %p2259_p9  ;;  %s211_s7 = scalar_lea.vmem [#allocation4], %s1596_s20 }
  0x28   : > { %s2804_s18 = scalar_select %p2286_p5, 1, 0 }
  0x29   : > { %s1776_s22 = scalar_select %p2259_p9, [#allocation3], [#allocation8] }
  0x2a   : > { %s1777_s25 = scalar_select %p2259_p9, %s2168_s28, 0 }
  0x2b   : > { %s2818_s22 = smov (!%p1792_p4, %s1776_s22), [#allocation9]  ;;  %s219_s8 = sshll.u32 %s211_s7, 4  ;;  %s2304_s8 = int_to_ptr.vmem [resolvable:$true] %s219_s8 }
  0x2c   : > { %s2820_s25 = smov (!%p1792_p4, %s1777_s25), 0  ;;  %p1599_p7 = scmp.ge.s32.totalorder %s2168_s28, 1 }
  0x2d   : > { %s212_s30 = sld [smem:[%s2818_s22 + %s2820_s25]]  ;;  %p227_p8 = scmp.lt.s32.totalorder %s2168_s28, 10 }
  0x2e   : > { %s2315_s20 = scalar_lea.sflag [#allocation5], %s207_s19  ;;  %p2048_p12 = pneg %p2293_p6 }
  0x2f   : > { %p2306_p11 = pnand %p1599_p7, %p227_p8  ;;  %s2051_s7 = scalar_lea.hbm %s2797_s4, 8192 }
  0x33   : > { %s1685_s11 = sshll.u32 %s212_s30, 10 }
  0x34   : > { %s2313_s10 = scalar_lea.hbm %s2797_s4, %s1685_s11 }
  0x35   : > { %s2046_s22 = scalar_lea.hbm %s2313_s10, 1024  ;;  %p2052_p1 = scmp.lt.u32.totalorder %s2313_s10, %s2797_s4 }
  0x36   : > { %p2047_p9 = scmp.ne.s32.totalorder %s2313_s10, %s2046_s22  ;;  %p2053_p3 = scmp.lt.u32.totalorder %s2051_s7, %s2046_s22 }
  0x37   : > { %p2055_p7 = scmp.lt.u32.totalorder %s2046_s22, %s2313_s10 }
  0x38   : > { %p2049_p13 = pnand %p2048_p12, %p2047_p9  ;;  %p2054_p4 = por %p2053_p3, %p2052_p1 }
  0x3a   : > { %p2050_p0 = pneg %p2049_p13  ;;  %p2056_p8 = por %p2055_p7, %p2054_p4 }
  0x3c   : > { %p2057_p5 = pnand %p2056_p8, %p2050_p0 }
  0x3e   : > { %2060 = shalt.err (!%p2057_p5)
}
  0x3f   : > { %s2061_s19 = scalar_lea.vmem %s2304_s8, 1024  ;;  %s2171_s14 = smov [#allocation4]  }
  0x40   : > { %p2062_p9 = scmp.ne.s32.totalorder %s2304_s8, %s2061_s19  ;;  %s2066_s25 = sshll.u32 %s2171_s14, 4  ;;  %s2067_s25 = int_to_ptr.vmem [resolvable:$false] %s2066_s25 }
  0x41   : > { %s2068_s30 = scalar_lea.vmem %s2067_s25, 2048  ;;  %p2069_p10 = scmp.lt.s32.totalorder %s2304_s8, %s2067_s25 }
  0x42   : > { %p2064_p13 = pnand %p2062_p9, %p2048_p12  ;;  %p2070_p1 = scmp.lt.s32.totalorder %s2068_s30, %s2061_s19 }
  0x44   : > { %p2065_p2 = pneg %p2064_p13  ;;  %p2071_p3 = por %p2070_p1, %p2069_p10 }
  0x46   : > { %p2072_p4 = pnand %p2071_p3, %p2065_p2 }
  0x48   : > { %2075 = shalt.err (!%p2072_p4)
}
  0x49   : > { %s2172_s22 = smov 64   ;;  %s2173_s7 = smov 4  }
  0x4a   : > { %1787 = dma.hbm_to_vmem [thread:$0]  (!%p2293_p6), %s2313_s10, 1024, %s2304_s8, %s2315_s20, %s2172_s22, %s2172_s22, %s2173_s7  }
  0x4b   : > { %231 = sbr.rel (%p2306_p11) target bundleno = 709 (0x2c5), region = 36  ;;  %s233_s11 = sand.u32 (!%p2306_p11), 1, %s2160_s26  }
  0x4c   : > { %s1600_s13 = sshll.u32 (!%p2306_p11), %s233_s11, 6  ;;  %s234_s14 = scalar_lea.sflag (!%p2306_p11), [#allocation5], %s233_s11 }
  0x4d   : > { %s2346_s19 = scalar_lea.vmem (!%p2306_p11), [#allocation4], %s1600_s13  ;;  %p2807_p10 = scmp.ne.s32.totalorder (!%p2306_p11), %s2802_s12, 0 }
  0x52   : > { %2135 = dma.done.wait (%p2807_p10), %s234_s14, 1024  }
  0x53   : > { %2137 = vsyncadd (%p2807_p10), %s234_s14, 4294966272  ;;  %s1602_s25 = sshll.u32 %s2245_s29, 5  ;;  %s290_s21 = sld [smem:[#allocation3 + %s2245_s29]]  ;;  %v2174_v0 = vmov 0   ;;  %v1898_v33 = vld [vmem:[%s2346_s19] sm:$0xff]   ;;  %v1899_v34 = vld [vmem:[%s2346_s19 + $0x8] sm:$0xff]  }
  0x54   : > { %572 = vmatprep.mubr.bf16.mxu0 %v2174_v0  ;;  %p279_p2 = scmp.lt.s32.totalorder %s1602_s25, 287  ;;  %692 = vmatprep.mubr.bf16.mxu1 %v2174_v0  ;;  %v1900_v35 = vld [vmem:[%s2346_s19 + $0x10] sm:$0xff]   ;;  %v1901_v36 = vld [vmem:[%s2346_s19 + $0x18] sm:$0xff]   ;;  %v1902_v37 = vld [vmem:[%s2346_s19 + $0x20] sm:$0xff]   ;;  %s1687_s12 = sshll.u32 %s2245_s29, 12 }
  0x55   : > { %1857 = vset.pattern.permute.xlu1 %v2174_v0  ;;  %1856 = vset.pattern.permute.xlu0 %v2174_v0  ;;  %v1903_v38 = vld [vmem:[%s2346_s19 + $0x28] sm:$0xff]   ;;  %v1904_v39 = vld [vmem:[%s2346_s19 + $0x30] sm:$0xff]   ;;  %v1905_v40 = vld [vmem:[%s2346_s19 + $0x38] sm:$0xff]   ;;  %s275_s19 = sand.u32 1, %s2148_s0   ;;  %s2734_s30 = scalar_lea.hbm %s2798_s5, %s1687_s12 }
  0x56   : > { %s2822_s25 = smov (!%p279_p2, %s1602_s25), 287  ;;  %s2743_s29 = scalar_lea.sflag [#allocation6], %s275_s19 }
  0x57   : > { %s1603_s8 = sshll.u32 %s2822_s25, 2  ;;  %s1605_s11 = sshll.u32 %s2822_s25, 3 }
  0x58   : > { %s2364_s10 = scalar_lea.vmem %s2794_s1, %s1603_s8  ;;  %s1601_s25 = sshll.u32 %s275_s19, 8 }
  0x59   : > { %p291_p5 = scmp.lt.s32.totalorder %s290_s21, 7  ;;  %v1882_v17 = vld [vmem:[%s2364_s10] sm:$0xff]   ;;  %v1883_v19 = vld [vmem:[%s2364_s10 + $0x8] sm:$0xff]   ;;  %v1884_v21 = vld [vmem:[%s2364_s10 + $0x10] sm:$0xff]   ;;  %s2698_s8 = scalar_lea.vmem [#allocation7], %s1601_s25 }
  0x5a   : > { %v1889_v18 = vld [vmem:[%s2364_s10 + $0x60] sm:$0xff]   ;;  %v1891_v20 = vld [vmem:[%s2364_s10 + $0x68] sm:$0xff]   ;;  %v1893_v22 = vld [vmem:[%s2364_s10 + $0x70] sm:$0xff]   ;;  %s1484_s9 = sshll.u32 %s2698_s8, 4  ;;  %p2808_p11 = scmp.ne.s32.totalorder %s2803_s17, 0  ;;  %s2736_s9 = int_to_ptr.vmem [resolvable:$true] %s1484_s9 }
  0x5b   : > { %s2824_s21 = smov (!%p291_p5, %s290_s21), 7  ;;  %v1885_v23 = vld [vmem:[%s2364_s10 + $0x18] sm:$0xff]   ;;  %v1886_v25 = vld [vmem:[%s2364_s10 + $0x20] sm:$0xff]   ;;  %v1887_v26 = vld [vmem:[%s2364_s10 + $0x28] sm:$0xff]   ;;  %s2076_s22 = scalar_lea.vmem %s2736_s9, 4096 }
  0x5c   : > { %s1686_s20 = sshll.u32 %s2824_s21, 7  ;;  %v1895_v24 = vld [vmem:[%s2364_s10 + $0x78] sm:$0xff]   ;;  %v1888_v27 = vld [vmem:[%s2364_s10 + $0x30] sm:$0xff]   ;;  %v1892_v29 = vld [vmem:[%s2364_s10 + $0x40] sm:$0xff]   ;;  %s2429_s21 = scalar_lea.vmem %s2795_s2, %s1605_s11 }
  0x5d   : > { %s2369_s7 = scalar_lea.vmem %s2796_s3, %s1686_s20  ;;  %v1890_v28 = vld [vmem:[%s2364_s10 + $0x38] sm:$0xff]   ;;  %v1894_v30 = vld [vmem:[%s2364_s10 + $0x48] sm:$0xff]   ;;  %v1896_v31 = vld [vmem:[%s2364_s10 + $0x50] sm:$0xff]   ;;  %p2077_p6 = scmp.ne.s32.totalorder %s2736_s9, %s2076_s22 }
  0x5e   : > { %v1858_v1 = vld [vmem:[%s2369_s7 + $0x4] ss:$8 sps:$4 sm:$0xff]   ;;  %v1860_v2 = vld [vmem:[%s2369_s7] ss:$8 sps:$4 sm:$0xff]   ;;  %v1861_v3 = vld [vmem:[%s2369_s7 + $0x14] ss:$8 sps:$4 sm:$0xff]  }
  0x5f   : > { %540 = vmatprep.subr.bf16.mxu0 %v1858_v1  ;;  %1760 = vmatprep.subr.bf16.mxu1 %v1858_v1  ;;  %v1863_v4 = vld [vmem:[%s2369_s7 + $0x10] ss:$8 sps:$4 sm:$0xff]   ;;  %v1864_v5 = vld [vmem:[%s2369_s7 + $0x24] ss:$8 sps:$4 sm:$0xff]   ;;  %v1866_v6 = vld [vmem:[%s2369_s7 + $0x20] ss:$8 sps:$4 sm:$0xff]   ;;  %p2078_p12 = pnand %p2077_p6, %p2808_p11 }
  0x60   : > { %541 = vmatpush1.bf16.msra.mxu0 %v1860_v2  ;;  %1768 = vmatpush1.bf16.msra.mxu1 %v1860_v2  ;;  %v1867_v7 = vld [vmem:[%s2369_s7 + $0x34] ss:$8 sps:$4 sm:$0xff]   ;;  %v1869_v8 = vld [vmem:[%s2369_s7 + $0x30] ss:$8 sps:$4 sm:$0xff]   ;;  %v1870_v9 = vld [vmem:[%s2369_s7 + $0x44] ss:$8 sps:$4 sm:$0xff]  }
  0x61   : > { %542 = vmatprep.subr.bf16.mxu0 %v1861_v3  ;;  %1761 = vmatprep.subr.bf16.mxu1 %v1861_v3  ;;  %v1872_v10 = vld [vmem:[%s2369_s7 + $0x40] ss:$8 sps:$4 sm:$0xff]   ;;  %v1873_v11 = vld [vmem:[%s2369_s7 + $0x54] ss:$8 sps:$4 sm:$0xff]   ;;  %v1875_v12 = vld [vmem:[%s2369_s7 + $0x50] ss:$8 sps:$4 sm:$0xff]   ;;  %p2079_p0 = pneg %p2078_p12 }
  0x62   : > { %v1876_v13 = vld [vmem:[%s2369_s7 + $0x64] ss:$8 sps:$4 sm:$0xff]   ;;  %v1878_v14 = vld [vmem:[%s2369_s7 + $0x60] ss:$8 sps:$4 sm:$0xff]   ;;  %v1879_v15 = vld [vmem:[%s2369_s7 + $0x74] ss:$8 sps:$4 sm:$0xff]  }
  0x63   : > { %v1881_v16 = vld [vmem:[%s2369_s7 + $0x70] ss:$8 sps:$4 sm:$0xff]   ;;  %v1214_v42 = vld [vmem:[%s2429_s21] sm:$0xff]  ;;  %v1215_v44 = vld [vmem:[%s2429_s21 + $0x8] sm:$0xff]  ;;  %s2175_s7 = smov [#allocation7]  }
  0x64   : > { %543 = vmatpush1.bf16.msra.mxu0 %v1863_v4  ;;  %1769 = vmatpush1.bf16.msra.mxu1 %v1863_v4  ;;  %v1897_v32 = vld [vmem:[%s2364_s10 + $0x58] sm:$0xff]   ;;  %v1216_v41 = vld [vmem:[%s2429_s21 + $0x10] sm:$0xff]  ;;  %v1219_v45 = vld [vmem:[%s2429_s21 + $0x28] sm:$0xff]  ;;  %s2080_s11 = sshll.u32 %s2175_s7, 4  ;;  %s2081_s11 = int_to_ptr.vmem [resolvable:$false] %s2080_s11 }
  0x65   : > { %544 = vmatprep.subr.bf16.mxu0 %v1864_v5  ;;  %1762 = vmatprep.subr.bf16.mxu1 %v1864_v5  ;;  %v1217_v43 = vld [vmem:[%s2429_s21 + $0x18] sm:$0xff]  ;;  %v1218_v46 = vld [vmem:[%s2429_s21 + $0x20] sm:$0xff]  ;;  %v1220_v48 = vld [vmem:[%s2429_s21 + $0x30] sm:$0xff]  ;;  %s2082_s13 = scalar_lea.vmem %s2081_s11, 8192  ;;  %p2083_p7 = scmp.lt.s32.totalorder %s2736_s9, %s2081_s11 }
  0x66   : > { %1258 = vperm.xlu1 %1857, %v1216_v41   ;;  %1248 = vperm.xlu0 %1856, %v1214_v42   ;;  %v1221_v47 = vld [vmem:[%s2429_s21 + $0x38] sm:$0xff]  ;;  %v1223_v49 = vld [vmem:[%s2429_s21 + $0x48] sm:$0xff]  ;;  %v1222_v50 = vld [vmem:[%s2429_s21 + $0x40] sm:$0xff]  ;;  %p2084_p8 = scmp.lt.s32.totalorder %s2082_s13, %s2076_s22 }
  0x67   : > { %v1225_v51 = vld [vmem:[%s2429_s21 + $0x58] sm:$0xff]  ;;  %v1224_v52 = vld [vmem:[%s2429_s21 + $0x50] sm:$0xff]  ;;  %v1227_v53 = vld [vmem:[%s2429_s21 + $0x68] sm:$0xff] }
  0x68   : > { %545 = vmatpush1.bf16.msra.mxu0 %v1866_v6  ;;  %1770 = vmatpush1.bf16.msra.mxu1 %v1866_v6  ;;  %v1226_v54 = vld [vmem:[%s2429_s21 + $0x60] sm:$0xff]  ;;  %v1229_v3 = vld [vmem:[%s2429_s21 + $0x78] sm:$0xff]  ;;  %v1228_v4 = vld [vmem:[%s2429_s21 + $0x70] sm:$0xff]  ;;  %p2085_p9 = por %p2084_p8, %p2083_p7 }
  0x69   : > { %546 = vmatprep.subr.bf16.mxu0 %v1867_v7  ;;  %1763 = vmatprep.subr.bf16.mxu1 %v1867_v7  ;;  %v1231_v5 = vld [vmem:[%s2429_s21 + $0x88] sm:$0xff]  ;;  %v1230_v6 = vld [vmem:[%s2429_s21 + $0x80] sm:$0xff]  ;;  %v1237_v41 = vld [vmem:[%s2429_s21 + $0xb8] sm:$0xff] }
  0x6a   : > { %1263 = vperm.xlu1 %1857, %v1217_v43   ;;  %1253 = vperm.xlu0 %1856, %v1215_v44   ;;  %v1236_v42 = vld [vmem:[%s2429_s21 + $0xb0] sm:$0xff]  ;;  %p2086_p13 = pnand %p2085_p9, %p2079_p0 }
  0x6c   : > { %547 = vmatpush1.bf16.msra.mxu0 %v1869_v8  ;;  %1771 = vmatpush1.bf16.msra.mxu1 %v1869_v8 }
  0x6d   : > { %548 = vmatprep.subr.bf16.mxu0 %v1870_v9  ;;  %1764 = vmatprep.subr.bf16.mxu1 %v1870_v9 }
  0x6e   : > { %1273 = vperm.xlu1 %1857, %v1219_v45   ;;  %1268 = vperm.xlu0 %1856, %v1218_v46  }
  0x70   : > { %549 = vmatpush1.bf16.msra.mxu0 %v1872_v10  ;;  %1772 = vmatpush1.bf16.msra.mxu1 %v1872_v10 }
  0x71   : > { %550 = vmatprep.subr.bf16.mxu0 %v1873_v11  ;;  %1765 = vmatprep.subr.bf16.mxu1 %v1873_v11 }
  0x72   : > { %1283 = vperm.xlu1 %1857, %v1221_v47   ;;  %1278 = vperm.xlu0 %1856, %v1220_v48  }
  0x74   : > { %551 = vmatpush1.bf16.msra.mxu0 %v1875_v12  ;;  %1773 = vmatpush1.bf16.msra.mxu1 %v1875_v12 }
  0x75   : > { %552 = vmatprep.subr.bf16.mxu0 %v1876_v13  ;;  %1766 = vmatprep.subr.bf16.mxu1 %v1876_v13 }
  0x76   : > { %1293 = vperm.xlu1 %1857, %v1223_v49   ;;  %1288 = vperm.xlu0 %1856, %v1222_v50   ;;  %v1239_v50 = vld [vmem:[%s2429_s21 + $0xc8] sm:$0xff] }
  0x78   : > { %553 = vmatpush1.bf16.msra.mxu0 %v1878_v14  ;;  %1774 = vmatpush1.bf16.msra.mxu1 %v1878_v14 }
  0x79   : > { %554 = vmatprep.subr.bf16.mxu0 %v1879_v15  ;;  %1767 = vmatprep.subr.bf16.mxu1 %v1879_v15 }
  0x7a   : > { %1303 = vperm.xlu1 %1857, %v1225_v51   ;;  %1298 = vperm.xlu0 %1856, %v1224_v52   ;;  %v1238_v51 = vld [vmem:[%s2429_s21 + $0xc0] sm:$0xff] }
  0x7c   : > { %555 = vmatpush1.bf16.msra.mxu0 %v1881_v16  ;;  %1775 = vmatpush1.bf16.msra.mxu1 %v1881_v16 }
  0x7d   : > { %1712 = vmatprep.subr.bf16.mxu1 %v1898_v33 }
  0x7e   : > { %1313 = vperm.xlu1 %1857, %v1227_v53   ;;  %1308 = vperm.xlu0 %1856, %v1226_v54  }
  0x7f   : > { %573 = vmatmul.mubr.bf16.vlgmr.msra.gmra.mrb[0].mxu0 %v1882_v17  ;;  %693 = vmatmul.mubr.bf16.vlgmr.msra.gmra.mrb[0].mxu1 %v1889_v18 }
  0x80   : > { %582 = vmatprep.mubr.bf16.mxu0 %v2174_v0  ;;  %702 = vmatprep.mubr.bf16.mxu1 %v2174_v0 }
  0x81   : > { %1713 = vmatpush3.bf16.msra.mxu1 %v1898_v33 }
  0x82   : > { %1714 = vmatprep.subr.bf16.mxu1 %v1899_v34  ;;  %1323 = vperm.xlu1 %1857, %v1229_v3  }
  0x83   : > { %1318 = vperm.xlu0 %1856, %v1228_v4  }
  0x85   : > { %1715 = vmatpush3.bf16.msra.mxu1 %v1899_v34 }
  0x86   : > { %1716 = vmatprep.subr.bf16.mxu1 %v1900_v35  ;;  %1333 = vperm.xlu1 %1857, %v1231_v5  }
  0x87   : > { %583 = vmatmul.mubr.bf16.gmra.mrb[4].mxu0 %v1883_v19  ;;  %703 = vmatmul.mubr.bf16.gmra.mrb[4].mxu1 %v1891_v20  ;;  %v1233_v19 = vld [vmem:[%s2429_s21 + $0x98] sm:$0xff]  ;;  %v1232_v20 = vld [vmem:[%s2429_s21 + $0x90] sm:$0xff] }
  0x88   : > { %592 = vmatprep.mubr.bf16.mxu0 %v2174_v0  ;;  %712 = vmatprep.mubr.bf16.mxu1 %v2174_v0 }
  0x89   : > { %1717 = vmatpush3.bf16.msra.mxu1 %v1900_v35  ;;  %1328 = vperm.xlu0 %1856, %v1230_v6  }
  0x8a   : > { %1718 = vmatprep.subr.bf16.mxu1 %v1901_v36  ;;  %1343 = vperm.xlu1 %1857, %v1233_v19  }
  0x8d   : > { %1719 = vmatpush3.bf16.msra.mxu1 %v1901_v36  ;;  %1338 = vperm.xlu0 %1856, %v1232_v20   ;;  %v1241_v20 = vld [vmem:[%s2429_s21 + $0xd8] sm:$0xff] }
  0x8e   : > { %1720 = vmatprep.subr.bf16.mxu1 %v1902_v37 }
  0x8f   : > { %593 = vmatmul.mubr.bf16.gmra.mrb[8].mxu0 %v1884_v21  ;;  %713 = vmatmul.mubr.bf16.gmra.mrb[8].mxu1 %v1893_v22 }
  0x90   : > { %602 = vmatprep.mubr.bf16.mxu0 %v2174_v0  ;;  %722 = vmatprep.mubr.bf16.mxu1 %v2174_v0 }
  0x91   : > { %1721 = vmatpush3.bf16.msra.mxu1 %v1902_v37 }
  0x92   : > { %1722 = vmatprep.subr.bf16.mxu1 %v1903_v38 }
  0x95   : > { %1723 = vmatpush3.bf16.msra.mxu1 %v1903_v38 }
  0x96   : > { %1724 = vmatprep.subr.bf16.mxu1 %v1904_v39 }
  0x97   : > { %603 = vmatmul.mubr.bf16.gmra.mrb[12].mxu0 %v1885_v23  ;;  %723 = vmatmul.mubr.bf16.gmra.mrb[12].mxu1 %v1895_v24 }
  0x98   : > { %612 = vmatprep.mubr.bf16.mxu0 %v2174_v0 }
  0x99   : > { %1725 = vmatpush3.bf16.msra.mxu1 %v1904_v39 }
  0x9a   : > { %1726 = vmatprep.subr.bf16.mxu1 %v1905_v40 }
  0x9d   : > { %1727 = vmatpush3.bf16.msra.mxu1 %v1905_v40 }
  0x9f   : > { %613 = vmatmul.mubr.bf16.gmra.mrb[16].mxu0 %v1886_v25 }
  0xa0   : > { %622 = vmatprep.mubr.bf16.mxu0 %v2174_v0 }
  0xa7   : > { %623 = vmatmul.mubr.bf16.gmra.mrb[20].mxu0 %v1887_v26  ;;  %v1235_v26 = vld [vmem:[%s2429_s21 + $0xa8] sm:$0xff] }
  0xa8   : > { %632 = vmatprep.mubr.bf16.mxu0 %v2174_v0  ;;  %1353 = vperm.xlu1 %1857, %v1235_v26  }
  0xac   : > { %1363 = vperm.xlu1 %1857, %v1237_v41   ;;  %v1242_v41 = vld [vmem:[%s2429_s21 + $0xe0] sm:$0xff] }
  0xaf   : > { %633 = vmatmul.mubr.bf16.gmra.mrb[24].mxu0 %v1888_v27  ;;  %v1234_v27 = vld [vmem:[%s2429_s21 + $0xa0] sm:$0xff] }
  0xb0   : > { %642 = vmatprep.mubr.bf16.mxu0 %v2174_v0  ;;  %1348 = vperm.xlu0 %1856, %v1234_v27  }
  0xb1   : > { %1373 = vperm.xlu1 %1857, %v1239_v50  }
  0xb4   : > { %1358 = vperm.xlu0 %1856, %v1236_v42  }
  0xb5   : > { %1383 = vperm.xlu1 %1857, %v1241_v20  }
  0xb7   : > { %643 = vmatmul.mubr.bf16.gmra.mrb[28].mxu0 %v1890_v28 }
  0xb8   : > { %652 = vmatprep.mubr.bf16.mxu0 %v2174_v0  ;;  %1368 = vperm.xlu0 %1856, %v1238_v51  }
  0xbf   : > { %653 = vmatmul.mubr.bf16.gmra.mrb[32].mxu0 %v1892_v29 }
  0xc0   : > { %662 = vmatprep.mubr.bf16.mxu0 %v2174_v0 }
  0xc7   : > { %663 = vmatmul.mubr.bf16.gmra.mrb[36].mxu0 %v1894_v30 }
  0xc8   : > { %672 = vmatprep.mubr.bf16.mxu0 %v2174_v0 }
  0xcf   : > { %673 = vmatmul.mubr.bf16.gmra.mrb[40].mxu0 %v1896_v31 }
  0xd0   : > { %682 = vmatprep.mubr.bf16.mxu0 %v2174_v0 }
  0xd7   : > { %683 = vmatmul.mubr.bf16.gmra.mrb[44].mxu0 %v1897_v32 }
 0x152   : > { %v2445_v55 = vpop.f32.mrb[0].mxu0  ;;  %v2447_v56 = vpop.f32.mrb[0].mxu1 }
 0x153   : > { %v1640_v57 = vmul.f32 -1.442695, %v2445_v55  ;;  %v2450_v58 = vpop.f32.mrb[1].mxu0  ;;  %v1664_v59 = vmul.f32 -1.442695, %v2447_v56  ;;  %v2453_v60 = vpop.f32.mrb[1].mxu1 }
 0x154   : > { %v2455_v61 = vpop.f32.mrb[2].mxu0  ;;  %v2457_v62 = vpop.f32.mrb[2].mxu1 }
 0x155   : > { %1906 = vpow2.f32 %v1640_v57  ;;  %v1641_v63 = vmul.f32 -1.442695, %v2455_v61  ;;  %v2460_v0 = vpop.f32.mrb[3].mxu0  ;;  %v1665_v1 = vmul.f32 -1.442695, %v2457_v62  ;;  %v2463_v2 = vpop.f32.mrb[3].mxu1 }
 0x156   : > { %1908 = vpow2.f32 %v1664_v59 }
 0x157   : > { %1910 = vpow2.f32 %v1641_v63 }
 0x158   : > { %1912 = vpow2.f32 %v1665_v1 }
 0x15a   : > { %v2469_v7 = vpop.f32.mrb[4].mxu0  ;;  %v2471_v8 = vpop.f32.mrb[4].mxu1 }
 0x15b   : > { %v1642_v9 = vmul.f32 -1.442695, %v2469_v7  ;;  %v2474_v10 = vpop.f32.mrb[5].mxu0  ;;  %v1666_v11 = vmul.f32 -1.442695, %v2471_v8  ;;  %v2477_v12 = vpop.f32.mrb[5].mxu1 }
 0x15c   : > { %v2479_v13 = vpop.f32.mrb[6].mxu0  ;;  %v2481_v14 = vpop.f32.mrb[6].mxu1 }
 0x15d   : > { %1914 = vpow2.f32 %v1642_v9  ;;  %v1643_v15 = vmul.f32 -1.442695, %v2479_v13  ;;  %v2484_v16 = vpop.f32.mrb[7].mxu0  ;;  %v1667_v17 = vmul.f32 -1.442695, %v2481_v14  ;;  %v2487_v18 = vpop.f32.mrb[7].mxu1 }
 0x15e   : > { %1916 = vpow2.f32 %v1666_v11 }
 0x15f   : > { %v1907_v21 = vpop.eup %1906  ;;  %1918 = vpow2.f32 %v1643_v15 }
 0x160   : > { %v1909_v22 = vpop.eup %1908  ;;  %v829_v23 = vadd.f32 1.0, %v1907_v21  ;;  %1920 = vpow2.f32 %v1667_v17  ;;  %v1240_v21 = vld [vmem:[%s2429_s21 + $0xd0] sm:$0xff] }
 0x161   : > { %v1911_v24 = vpop.eup %1910  ;;  %v853_v25 = vadd.f32 1.0, %v1909_v22  ;;  %1378 = vperm.xlu0 %1856, %v1240_v21  }
 0x162   : > { %v1913_v28 = vpop.eup %1912  ;;  %1922 = vrcp.f32 %v829_v23  ;;  %v830_v29 = vadd.f32 1.0, %v1911_v24  ;;  %v2493_v30 = vpop.f32.mrb[8].mxu0 }
 0x163   : > { %v2495_v31 = vpop.f32.mrb[8].mxu1  ;;  %v1644_v32 = vmul.f32 -1.442695, %v2493_v30  ;;  %v2498_v33 = vpop.f32.mrb[9].mxu0  ;;  %1924 = vrcp.f32 %v853_v25  ;;  %v854_v34 = vadd.f32 1.0, %v1913_v28 }
 0x164   : > { %1926 = vrcp.f32 %v830_v29  ;;  %v2500_v35 = vpop.f32.mrb[10].mxu0  ;;  %v1668_v36 = vmul.f32 -1.442695, %v2495_v31  ;;  %v2503_v37 = vpop.f32.mrb[9].mxu1 }
 0x165   : > { %1928 = vpow2.f32 %v1644_v32  ;;  %v1645_v38 = vmul.f32 -1.442695, %v2500_v35  ;;  %v2506_v39 = vpop.f32.mrb[11].mxu0  ;;  %v2508_v40 = vpop.f32.mrb[10].mxu1  ;;  %1388 = vperm.xlu0 %1856, %v1242_v41  }
 0x166   : > { %1930 = vrcp.f32 %v854_v34  ;;  %v1669_v43 = vmul.f32 -1.442695, %v2508_v40  ;;  %v2513_v44 = vpop.f32.mrb[11].mxu1 }
 0x167   : > { %v1915_v45 = vpop.eup %1914  ;;  %1932 = vpow2.f32 %v1645_v38  ;;  %v1243_v38 = vld [vmem:[%s2429_s21 + $0xe8] sm:$0xff] }
 0x168   : > { %v1917_v46 = vpop.eup %1916  ;;  %v831_v47 = vadd.f32 1.0, %v1915_v45  ;;  %1934 = vpow2.f32 %v1668_v36  ;;  %1393 = vperm.xlu1 %1857, %v1243_v38  }
 0x169   : > { %v1919_v48 = vpop.eup %1918  ;;  %v855_v49 = vadd.f32 1.0, %v1917_v46  ;;  %1936 = vpow2.f32 %v1669_v43 }
 0x16a   : > { %v1921_v52 = vpop.eup %1920  ;;  %1938 = vrcp.f32 %v831_v47  ;;  %v832_v53 = vadd.f32 1.0, %v1919_v48  ;;  %v2517_v54 = vpop.f32.mrb[12].mxu0 }
 0x16b   : > { %v2519_v57 = vpop.f32.mrb[12].mxu1  ;;  %v1646_v59 = vmul.f32 -1.442695, %v2517_v54  ;;  %v2522_v63 = vpop.f32.mrb[13].mxu0  ;;  %1940 = vrcp.f32 %v855_v49  ;;  %v856_v1 = vadd.f32 1.0, %v1921_v52 }
 0x16c   : > { %v1923_v3 = vpop.eup %1922  ;;  %1942 = vrcp.f32 %v832_v53  ;;  %v2524_v4 = vpop.f32.mrb[14].mxu0  ;;  %v1670_v5 = vmul.f32 -1.442695, %v2519_v57 }
 0x16d   : > { %v2527_v6 = vpop.f32.mrb[13].mxu1  ;;  %v1925_v9 = vpop.eup %1924  ;;  %v925_v11 = vmul.f32 %v1923_v3, %v2445_v55  ;;  %1944 = vpow2.f32 %v1646_v59  ;;  %v1647_v15 = vmul.f32 -1.442695, %v2524_v4  ;;  %v1245_v59 = vld [vmem:[%s2429_s21 + $0xf8] sm:$0xff] }
 0x16e   : > { %v2531_v17 = vpop.f32.mrb[15].mxu0  ;;  %v2533_v19 = vpop.f32.mrb[14].mxu1  ;;  %v949_v23 = vmul.f32 %v1925_v9, %v2447_v56  ;;  %1946 = vrcp.f32 %v856_v1  ;;  %v1244_v1 = vld [vmem:[%s2429_s21 + $0xf0] sm:$0xff]  ;;  %1403 = vperm.xlu1 %1857, %v1245_v59  }
 0x16f   : > { %v1927_v22 = vpop.eup %1926  ;;  %v1671_v24 = vmul.f32 -1.442695, %v2533_v19  ;;  %v2539_v25 = vpop.f32.mrb[15].mxu1  ;;  %v957_v26 = vmul.f32 %v925_v11, %v2450_v58  ;;  %1948 = vpow2.f32 %v1647_v15  ;;  %1398 = vperm.xlu0 %1856, %v1244_v1  }
 0x170   : > { %v1929_v55 = vpop.eup %1928  ;;  %v926_v27 = vmul.f32 %v1927_v22, %v2455_v61  ;;  %v2544_v32 = vmul.f32 %v949_v23, %v2453_v60  ;;  %1950 = vpow2.f32 %v1670_v5 }
 0x171   : > { %v1931_v28 = vpop.eup %1930  ;;  %v833_v29 = vadd.f32 1.0, %v1929_v55  ;;  %1952 = vpow2.f32 %v1671_v24 }
 0x172   : > { %v1933_v56 = vpop.eup %1932  ;;  %v958_v34 = vmul.f32 %v926_v27, %v2460_v0  ;;  %v950_v36 = vmul.f32 %v1931_v28, %v2457_v62  ;;  %v2550_v42 = vpop.f32.mrb[16].mxu0 }
 0x173   : > { %v1935_v58 = vpop.eup %1934  ;;  %1954 = vrcp.f32 %v833_v29  ;;  %v834_v61 = vadd.f32 1.0, %v1933_v56  ;;  %v1648_v60 = vmul.f32 -1.442695, %v2550_v42  ;;  %v2553_v46 = vpop.f32.mrb[17].mxu0 }
 0x174   : > { %v1937_v43 = vpop.eup %1936  ;;  %v989_v45 = vpack.c.bf16 %v958_v34, %v957_v26  ;;  %v2556_v47 = vmul.f32 %v950_v36, %v2463_v2  ;;  %v857_v62 = vadd.f32 1.0, %v1935_v58  ;;  %v2558_v48 = vpop.f32.mrb[18].mxu0 }
 0x175   : > { %v1939_v0 = vpop.eup %1938  ;;  %1956 = vrcp.f32 %v834_v61  ;;  %v858_v49 = vadd.f32 1.0, %v1937_v43  ;;  %v1649_v52 = vmul.f32 -1.442695, %v2558_v48  ;;  %v2562_v53 = vpop.f32.mrb[19].mxu0 }
 0x176   : > { %v1941_v50 = vpop.eup %1940  ;;  %v927_v51 = vmul.f32 %v1939_v0, %v2469_v7  ;;  %1958 = vpow2.f32 %v1648_v60  ;;  %1728 = vmatprep.mubr.bf16.mxu1 %v989_v45  ;;  %v1001_v2 = vpack.c.bf16 %v2556_v47, %v2544_v32 }
 0x177   : > { %v1943_v3 = vpop.eup %1942  ;;  %v951_v5 = vmul.f32 %v1941_v50, %v2471_v8  ;;  %1960 = vrcp.f32 %v857_v62 }
 0x178   : > { %v1945_v9 = vpop.eup %1944  ;;  %v959_v11 = vmul.f32 %v927_v51, %v2474_v10  ;;  %v928_v7 = vmul.f32 %v1943_v3, %v2479_v13  ;;  %1962 = vpow2.f32 %v1649_v52 }
 0x179   : > { %v1947_v15 = vpop.eup %1946  ;;  %v835_v20 = vadd.f32 1.0, %v1945_v9  ;;  %v2572_v21 = vmul.f32 %v951_v5, %v2477_v12  ;;  %1964 = vrcp.f32 %v858_v49 }
 0x17a   : > { %v1949_v22 = vpop.eup %1948  ;;  %v960_v23 = vmul.f32 %v928_v7, %v2484_v16  ;;  %v952_v8 = vmul.f32 %v1947_v15, %v2481_v14  ;;  %v2576_v10 = vpop.f32.mrb[20].mxu0 }
 0x17b   : > { %v1951_v24 = vpop.eup %1950  ;;  %1966 = vrcp.f32 %v835_v20  ;;  %v836_v55 = vadd.f32 1.0, %v1949_v22  ;;  %v1650_v27 = vmul.f32 -1.442695, %v2576_v10  ;;  %v2579_v28 = vpop.f32.mrb[21].mxu0 }
 0x17c   : > { %v1953_v13 = vpop.eup %1952  ;;  %v990_v26 = vpack.c.bf16 %v960_v23, %v959_v11  ;;  %v2582_v12 = vmul.f32 %v952_v8, %v2487_v18  ;;  %v859_v29 = vadd.f32 1.0, %v1951_v24  ;;  %v2584_v16 = vpop.f32.mrb[22].mxu0 }
 0x17d   : > { %v1955_v56 = vpop.eup %1954  ;;  %1968 = vrcp.f32 %v836_v55  ;;  %v860_v14 = vadd.f32 1.0, %v1953_v13  ;;  %v1651_v36 = vmul.f32 -1.442695, %v2584_v16  ;;  %v2588_v38 = vpop.f32.mrb[23].mxu0 }
 0x17e   : > { %v929_v34 = vmul.f32 %v1955_v56, %v2493_v30  ;;  %1970 = vpow2.f32 %v1650_v27  ;;  %1729 = vmatmul.mubr.bf16.vlgmr.msra.gmra.mrb[16].mxu1 %v990_v26  ;;  %v1002_v41 = vpack.c.bf16 %v2582_v12, %v2572_v21 }
 0x17f   : > { %v1957_v58 = vpop.eup %1956  ;;  %1972 = vrcp.f32 %v859_v29 }
 0x180   : > { %v1959_v18 = vpop.eup %1958  ;;  %v961_v61 = vmul.f32 %v929_v34, %v2498_v33  ;;  %v930_v43 = vmul.f32 %v1957_v58, %v2500_v35  ;;  %1974 = vpow2.f32 %v1651_v36 }
 0x181   : > { %v1961_v45 = vpop.eup %1960  ;;  %v837_v60 = vadd.f32 1.0, %v1959_v18  ;;  %1976 = vrcp.f32 %v860_v14 }
 0x182   : > { %v1963_v30 = vpop.eup %1962  ;;  %v962_v62 = vmul.f32 %v930_v43, %v2506_v39  ;;  %v953_v0 = vmul.f32 %v1961_v45, %v2495_v31  ;;  %v2596_v51 = vpop.f32.mrb[24].mxu0 }
 0x183   : > { %v1965_v49 = vpop.eup %1964  ;;  %1978 = vrcp.f32 %v837_v60  ;;  %v838_v50 = vadd.f32 1.0, %v1963_v30  ;;  %v1652_v59 = vmul.f32 -1.442695, %v2596_v51  ;;  %v2599_v33 = vpop.f32.mrb[25].mxu0 }
 0x184   : > { %v991_v52 = vpack.c.bf16 %v962_v62, %v961_v61  ;;  %v2602_v35 = vmul.f32 %v953_v0, %v2503_v37  ;;  %v954_v1 = vmul.f32 %v1965_v49, %v2508_v40  ;;  %v2605_v39 = vpop.f32.mrb[26].mxu0 }
 0x185   : > { %v1967_v3 = vpop.eup %1966  ;;  %1980 = vrcp.f32 %v838_v50  ;;  %v1653_v5 = vmul.f32 -1.442695, %v2605_v39  ;;  %v2609_v9 = vpop.f32.mrb[27].mxu0 }
 0x186   : > { %v931_v31 = vmul.f32 %v1967_v3, %v2517_v54  ;;  %1982 = vpow2.f32 %v1652_v59  ;;  %1732 = vmatprep.mubr.bf16.mxu1 %v991_v52  ;;  %v2612_v11 = vmul.f32 %v954_v1, %v2513_v44 }
 0x187   : > { %v1969_v7 = vpop.eup %1968  ;;  %1984 = vpow2.f32 %v1653_v5 }
 0x188   : > { %v1971_v37 = vpop.eup %1970  ;;  %v963_v15 = vmul.f32 %v931_v31, %v2522_v63  ;;  %v932_v40 = vmul.f32 %v1969_v7, %v2524_v4  ;;  %v1003_v20 = vpack.c.bf16 %v2612_v11, %v2602_v35 }
 0x189   : > { %v1973_v54 = vpop.eup %1972  ;;  %v839_v22 = vadd.f32 1.0, %v1971_v37 }
 0x18a   : > { %v1975_v23 = vpop.eup %1974  ;;  %v964_v8 = vmul.f32 %v932_v40, %v2531_v17  ;;  %v955_v24 = vmul.f32 %v1973_v54, %v2519_v57  ;;  %v2620_v13 = vpop.f32.mrb[28].mxu0 }
 0x18b   : > { %v1977_v55 = vpop.eup %1976  ;;  %1986 = vrcp.f32 %v839_v22  ;;  %v840_v44 = vadd.f32 1.0, %v1975_v23  ;;  %v1654_v63 = vmul.f32 -1.442695, %v2620_v13  ;;  %v2623_v4 = vpop.f32.mrb[29].mxu0 }
 0x18c   : > { %v992_v26 = vpack.c.bf16 %v964_v8, %v963_v15  ;;  %v2626_v27 = vmul.f32 %v955_v24, %v2527_v6  ;;  %v956_v29 = vmul.f32 %v1977_v55, %v2533_v19  ;;  %v2629_v17 = vpop.f32.mrb[30].mxu0 }
 0x18d   : > { %v1979_v56 = vpop.eup %1978  ;;  %1988 = vrcp.f32 %v840_v44  ;;  %v1655_v14 = vmul.f32 -1.442695, %v2629_v17  ;;  %v2633_v34 = vpop.f32.mrb[31].mxu0 }
 0x18e   : > { %v933_v57 = vmul.f32 %v1979_v56, %v2550_v42  ;;  %1990 = vpow2.f32 %v1654_v63  ;;  %1733 = vmatmul.mubr.bf16.gmra.mrb[20].mxu1 %v992_v26  ;;  %v2636_v36 = vmul.f32 %v956_v29, %v2539_v25 }
 0x18f   : > { %v1981_v58 = vpop.eup %1980  ;;  %1992 = vpow2.f32 %v1655_v14 }
 0x190   : > { %v1983_v6 = vpop.eup %1982  ;;  %v965_v18 = vmul.f32 %v933_v57, %v2553_v46  ;;  %v934_v19 = vmul.f32 %v1981_v58, %v2558_v48  ;;  %v1004_v61 = vpack.c.bf16 %v2636_v36, %v2626_v27 }
 0x191   : > { %v841_v42 = vadd.f32 1.0, %v1983_v6  ;;  %v1985_v43 = vpop.eup %1984 }
 0x192   : > { %v966_v45 = vmul.f32 %v934_v19, %v2562_v53  ;;  %v842_v60 = vadd.f32 1.0, %v1985_v43  ;;  %v2643_v30 = vpop.f32.mrb[32].mxu0 }
 0x193   : > { %1994 = vrcp.f32 %v841_v42  ;;  %v1656_v62 = vmul.f32 -1.442695, %v2643_v30  ;;  %v2646_v0 = vpop.f32.mrb[33].mxu0 }
 0x194   : > { %v993_v25 = vpack.c.bf16 %v966_v45, %v965_v18  ;;  %1996 = vrcp.f32 %v842_v60  ;;  %v2648_v48 = vpop.f32.mrb[34].mxu0 }
 0x195   : > { %v1987_v46 = vpop.eup %1986  ;;  %1998 = vpow2.f32 %v1656_v62  ;;  %v1657_v50 = vmul.f32 -1.442695, %v2648_v48  ;;  %v2652_v52 = vpop.f32.mrb[35].mxu0 }
 0x196   : > { %v935_v49 = vmul.f32 %v1987_v46, %v2576_v10  ;;  %1736 = vmatprep.mubr.bf16.mxu1 %v993_v25 }
 0x197   : > { %v1989_v53 = vpop.eup %1988  ;;  %2000 = vpow2.f32 %v1657_v50 }
 0x198   : > { %v1991_v59 = vpop.eup %1990  ;;  %v967_v1 = vmul.f32 %v935_v49, %v2579_v28  ;;  %v936_v3 = vmul.f32 %v1989_v53, %v2584_v16 }
 0x199   : > { %v843_v31 = vadd.f32 1.0, %v1991_v59  ;;  %v1993_v5 = vpop.eup %1992 }
 0x19a   : > { %v968_v7 = vmul.f32 %v936_v3, %v2588_v38  ;;  %v844_v37 = vadd.f32 1.0, %v1993_v5  ;;  %v2657_v10 = vpop.f32.mrb[36].mxu0 }
 0x19b   : > { %2002 = vrcp.f32 %v843_v31  ;;  %v1658_v40 = vmul.f32 -1.442695, %v2657_v10  ;;  %v2660_v54 = vpop.f32.mrb[37].mxu0 }
 0x19c   : > { %v994_v15 = vpack.c.bf16 %v968_v7, %v967_v1  ;;  %2004 = vrcp.f32 %v844_v37  ;;  %v2662_v23 = vpop.f32.mrb[38].mxu0 }
 0x19d   : > { %v1995_v22 = vpop.eup %1994  ;;  %2006 = vpow2.f32 %v1658_v40  ;;  %v1659_v16 = vmul.f32 -1.442695, %v2662_v23  ;;  %v2666_v8 = vpop.f32.mrb[39].mxu0 }
 0x19e   : > { %v937_v28 = vmul.f32 %v1995_v22, %v2596_v51  ;;  %1737 = vmatmul.mubr.bf16.gmra.mrb[24].mxu1 %v994_v15  ;;  %v1997_v38 = vpop.eup %1996 }
 0x19f   : > { %v1999_v24 = vpop.eup %1998  ;;  %v938_v44 = vmul.f32 %v1997_v38, %v2605_v39  ;;  %2008 = vpow2.f32 %v1659_v16 }
 0x1a0   : > { %v969_v55 = vmul.f32 %v937_v28, %v2599_v33  ;;  %v845_v26 = vadd.f32 1.0, %v1999_v24 }
 0x1a1   : > { %v2001_v63 = vpop.eup %2000  ;;  %v970_v29 = vmul.f32 %v938_v44, %v2609_v9 }
 0x1a2   : > { %2010 = vrcp.f32 %v845_v26  ;;  %v846_v56 = vadd.f32 1.0, %v2001_v63  ;;  %v674_v51 = vpop.f32.mrb[40].mxu0 }
 0x1a3   : > { %v995_v57 = vpack.c.bf16 %v970_v29, %v969_v55  ;;  %v1660_v14 = vmul.f32 -1.442695, %v674_v51  ;;  %v676_v58 = vpop.f32.mrb[41].mxu0 }
 0x1a4   : > { %2012 = vrcp.f32 %v846_v56  ;;  %v678_v18 = vpop.f32.mrb[42].mxu0 }
 0x1a5   : > { %v2003_v6 = vpop.eup %2002  ;;  %2014 = vpow2.f32 %v1660_v14  ;;  %v1661_v33 = vmul.f32 -1.442695, %v678_v18  ;;  %v680_v42 = vpop.f32.mrb[43].mxu0  ;;  %1740 = vmatprep.mubr.bf16.mxu1 %v995_v57 }
 0x1a6   : > { %v939_v19 = vmul.f32 %v2003_v6, %v2620_v13  ;;  %v2005_v39 = vpop.eup %2004 }
 0x1a7   : > { %v2007_v43 = vpop.eup %2006  ;;  %v940_v9 = vmul.f32 %v2005_v39, %v2629_v17  ;;  %2016 = vpow2.f32 %v1661_v33 }
 0x1a8   : > { %v971_v45 = vmul.f32 %v939_v19, %v2623_v4  ;;  %v847_v60 = vadd.f32 1.0, %v2007_v43 }
 0x1a9   : > { %v2009_v25 = vpop.eup %2008  ;;  %v972_v62 = vmul.f32 %v940_v9, %v2633_v34 }
 0x1aa   : > { %2018 = vrcp.f32 %v847_v60  ;;  %v848_v46 = vadd.f32 1.0, %v2009_v25  ;;  %v684_v49 = vpop.f32.mrb[44].mxu0 }
 0x1ab   : > { %v996_v50 = vpack.c.bf16 %v972_v62, %v971_v45  ;;  %v1662_v13 = vmul.f32 -1.442695, %v684_v49  ;;  %v686_v53 = vpop.f32.mrb[45].mxu0 }
 0x1ac   : > { %v2011_v59 = vpop.eup %2010  ;;  %2020 = vrcp.f32 %v848_v46  ;;  %v688_v1 = vpop.f32.mrb[46].mxu0 }
 0x1ad   : > { %v941_v3 = vmul.f32 %v2011_v59, %v2643_v30  ;;  %2022 = vpow2.f32 %v1662_v13  ;;  %v1663_v4 = vmul.f32 -1.442695, %v688_v1  ;;  %v690_v31 = vpop.f32.mrb[47].mxu0  ;;  %1741 = vmatmul.mubr.bf16.gmra.mrb[28].mxu1 %v996_v50 }
 0x1ae   : > { %v2013_v17 = vpop.eup %2012 }
 0x1af   : > { %v2015_v5 = vpop.eup %2014  ;;  %v973_v7 = vmul.f32 %v941_v3, %v2646_v0  ;;  %v942_v34 = vmul.f32 %v2013_v17, %v2648_v48  ;;  %2024 = vpow2.f32 %v1663_v4 }
 0x1b0   : > { %v849_v37 = vadd.f32 1.0, %v2015_v5 }
 0x1b1   : > { %v2017_v15 = vpop.eup %2016  ;;  %v974_v40 = vmul.f32 %v942_v34, %v2652_v52 }
 0x1b2   : > { %2026 = vrcp.f32 %v849_v37  ;;  %v850_v22 = vadd.f32 1.0, %v2017_v15 }
 0x1b3   : > { %v997_v28 = vpack.c.bf16 %v974_v40, %v973_v7 }
 0x1b4   : > { %v2019_v16 = vpop.eup %2018  ;;  %2028 = vrcp.f32 %v850_v22 }
 0x1b5   : > { %v943_v30 = vmul.f32 %v2019_v16, %v2657_v10  ;;  %1744 = vmatprep.mubr.bf16.mxu1 %v997_v28 }
 0x1b6   : > { %v2021_v38 = vpop.eup %2020 }
 0x1b7   : > { %v2023_v24 = vpop.eup %2022  ;;  %v975_v55 = vmul.f32 %v943_v30, %v2660_v54  ;;  %v944_v0 = vmul.f32 %v2021_v38, %v2662_v23 }
 0x1b8   : > { %v851_v48 = vadd.f32 1.0, %v2023_v24 }
 0x1b9   : > { %v2025_v44 = vpop.eup %2024  ;;  %v976_v26 = vmul.f32 %v944_v0, %v2666_v8 }
 0x1ba   : > { %2030 = vrcp.f32 %v851_v48  ;;  %v852_v52 = vadd.f32 1.0, %v2025_v44 }
 0x1bb   : > { %v998_v63 = vpack.c.bf16 %v976_v26, %v975_v55 }
 0x1bc   : > { %v2027_v29 = vpop.eup %2026  ;;  %2032 = vrcp.f32 %v852_v52 }
 0x1bd   : > { %v945_v56 = vmul.f32 %v2027_v29, %v674_v51  ;;  %1745 = vmatmul.mubr.bf16.gmra.mrb[32].mxu1 %v998_v63  ;;  %v1259_v51 = vpop.permute.xlu1 %1258 }
 0x1be   : > { %v2029_v57 = vpop.eup %2028 }
 0x1bf   : > { %v977_v10 = vmul.f32 %v945_v56, %v676_v58  ;;  %v946_v14 = vmul.f32 %v2029_v57, %v678_v18  ;;  %v1249_v58 = vpop.permute.xlu0 %1248 }
 0x1c1   : > { %v978_v6 = vmul.f32 %v946_v14, %v680_v42 }
 0x1c3   : > { %v999_v19 = vpack.c.bf16 %v978_v6, %v977_v10  ;;  %v1254_v12 = vpop.permute.xlu0 %1253 }
 0x1c4   : > { %v2031_v54 = vpop.eup %2030 }
 0x1c5   : > { %v947_v23 = vmul.f32 %v2031_v54, %v684_v49  ;;  %1748 = vmatprep.mubr.bf16.mxu1 %v999_v19 }
 0x1c6   : > { %v2033_v33 = vpop.eup %2032 }
 0x1c7   : > { %v979_v39 = vmul.f32 %v947_v23, %v686_v53  ;;  %v948_v8 = vmul.f32 %v2033_v33, %v688_v1 }
 0x1c9   : > { %v980_v43 = vmul.f32 %v948_v8, %v690_v31 }
 0x1cb   : > { %v1000_v45 = vpack.c.bf16 %v980_v43, %v979_v39 }
 0x1cd   : > { %1749 = vmatmul.mubr.bf16.gmra.mrb[36].mxu1 %v1000_v45 }
 0x1ce   : > { %1752 = vmatprep.mubr.bf16.mxu1 %v1001_v2  ;;  %v1264_v2 = vpop.permute.xlu1 %1263 }
 0x1d2   : > { %v1274_v27 = vpop.permute.xlu1 %1273 }
 0x1d5   : > { %1753 = vmatmul.mubr.bf16.gmra.mrb[40].mxu1 %v1002_v41 }
 0x1d6   : > { %1756 = vmatprep.mubr.bf16.mxu1 %v1003_v20  ;;  %v1269_v20 = vpop.permute.xlu0 %1268  ;;  %v1284_v25 = vpop.permute.xlu1 %1283 }
 0x1da   : > { %v1279_v36 = vpop.permute.xlu0 %1278  ;;  %v1294_v59 = vpop.permute.xlu1 %1293 }
 0x1dd   : > { %1757 = vmatmul.mubr.bf16.gmra.mrb[44].mxu1 %v1004_v61 }
 0x1de   : > { %v1289_v53 = vpop.permute.xlu0 %1288  ;;  %v1304_v17 = vpop.permute.xlu1 %1303 }
 0x1e2   : > { %v1299_v1 = vpop.permute.xlu0 %1298  ;;  %v1314_v22 = vpop.permute.xlu1 %1313 }
 0x1e6   : > { %v1309_v40 = vpop.permute.xlu0 %1308  ;;  %v1324_v24 = vpop.permute.xlu1 %1323 }
 0x1ea   : > { %v1319_v28 = vpop.permute.xlu0 %1318  ;;  %v1334_v63 = vpop.permute.xlu1 %1333 }
 0x1ee   : > { %v1329_v52 = vpop.permute.xlu0 %1328  ;;  %v1344_v56 = vpop.permute.xlu1 %1343 }
 0x1f2   : > { %v1339_v29 = vpop.permute.xlu0 %1338  ;;  %v1354_v39 = vpop.permute.xlu1 %1353 }
 0x1f6   : > { %v1349_v6 = vpop.permute.xlu0 %1348  ;;  %v1364_v45 = vpop.permute.xlu1 %1363 }
 0x1fa   : > { %v1359_v43 = vpop.permute.xlu0 %1358 }
 0x251   : > { %v1730_v18 = vpop.f32.mrb[16].mxu1 }
 0x252   : > { %v1408_v32 = vmul.f32 %v1730_v18, %v1259_v51  ;;  %v1087_v47 = vpop.f32.mrb[17].mxu1  ;;  %v1369_v51 = vpop.permute.xlu0 %1368 }
 0x253   : > { %v1406_v42 = vmul.f32 %v1249_v58, %v1087_v47  ;;  %v1731_v21 = vpop.f32.mrb[18].mxu1  ;;  %v1374_v58 = vpop.permute.xlu1 %1373 }
 0x254   : > { %1440 = vst [vmem:[%s2698_s8 + $0x10] sm:$0xff] %v1408_v32  ;;  %v1409_v41 = vmul.f32 %v1731_v21, %v1264_v2  ;;  %v1090_v35 = vpop.f32.mrb[19].mxu1 }
 0x255   : > { %1438 = vst [vmem:[%s2698_s8] sm:$0xff] %v1406_v42  ;;  %v1407_v11 = vmul.f32 %v1254_v12, %v1090_v35 }
 0x256   : > { %1441 = vst [vmem:[%s2698_s8 + $0x18] sm:$0xff] %v1409_v41  ;;  %v1379_v41 = vpop.permute.xlu0 %1378 }
 0x257   : > { %1439 = vst [vmem:[%s2698_s8 + $0x8] sm:$0xff] %v1407_v11  ;;  %v1384_v11 = vpop.permute.xlu1 %1383 }
 0x261   : > { %v1734_v61 = vpop.f32.mrb[20].mxu1 }
 0x262   : > { %v1412_v9 = vmul.f32 %v1734_v61, %v1279_v36  ;;  %v1103_v60 = vpop.f32.mrb[21].mxu1  ;;  %v1389_v61 = vpop.permute.xlu0 %1388 }
 0x263   : > { %v1410_v62 = vmul.f32 %v1269_v20, %v1103_v60  ;;  %v1735_v46 = vpop.f32.mrb[22].mxu1 }
 0x264   : > { %1444 = vst [vmem:[%s2698_s8 + $0x30] sm:$0xff] %v1412_v9  ;;  %v1413_v49 = vmul.f32 %v1735_v46, %v1284_v25  ;;  %v1106_v50 = vpop.f32.mrb[23].mxu1  ;;  %v1394_v46 = vpop.permute.xlu1 %1393 }
 0x265   : > { %1442 = vst [vmem:[%s2698_s8 + $0x20] sm:$0xff] %v1410_v62  ;;  %v1411_v13 = vmul.f32 %v1274_v27, %v1106_v50 }
 0x266   : > { %1445 = vst [vmem:[%s2698_s8 + $0x38] sm:$0xff] %v1413_v49  ;;  %v1399_v50 = vpop.permute.xlu0 %1398 }
 0x267   : > { %1443 = vst [vmem:[%s2698_s8 + $0x28] sm:$0xff] %v1411_v13 }
 0x271   : > { %v1738_v3 = vpop.f32.mrb[24].mxu1 }
 0x272   : > { %v1416_v4 = vmul.f32 %v1738_v3, %v1299_v1  ;;  %v1119_v31 = vpop.f32.mrb[25].mxu1  ;;  %v1404_v1 = vpop.permute.xlu1 %1403 }
 0x273   : > { %v1414_v5 = vmul.f32 %v1289_v53, %v1119_v31  ;;  %v1739_v7 = vpop.f32.mrb[26].mxu1 }
 0x274   : > { %1448 = vst [vmem:[%s2698_s8 + $0x50] sm:$0xff] %v1416_v4  ;;  %v1417_v34 = vmul.f32 %v1739_v7, %v1304_v17  ;;  %v1122_v37 = vpop.f32.mrb[27].mxu1 }
 0x275   : > { %1446 = vst [vmem:[%s2698_s8 + $0x40] sm:$0xff] %v1414_v5  ;;  %v1415_v15 = vmul.f32 %v1294_v59, %v1122_v37 }
 0x276   : > { %1449 = vst [vmem:[%s2698_s8 + $0x58] sm:$0xff] %v1417_v34 }
 0x277   : > { %1447 = vst [vmem:[%s2698_s8 + $0x48] sm:$0xff] %v1415_v15 }
 0x280   : > { %v1742_v16 = vpop.f32.mrb[28].mxu1 }
 0x281   : > { %v1420_v30 = vmul.f32 %v1742_v16, %v1319_v28  ;;  %v1135_v38 = vpop.f32.mrb[29].mxu1 }
 0x282   : > { %v1418_v55 = vmul.f32 %v1309_v40, %v1135_v38  ;;  %v1743_v0 = vpop.f32.mrb[30].mxu1 }
 0x283   : > { %1452 = vst [vmem:[%s2698_s8 + $0x70] sm:$0xff] %v1420_v30  ;;  %v1421_v48 = vmul.f32 %v1743_v0, %v1324_v24  ;;  %v1138_v44 = vpop.f32.mrb[31].mxu1 }
 0x284   : > { %1450 = vst [vmem:[%s2698_s8 + $0x60] sm:$0xff] %v1418_v55  ;;  %v1419_v26 = vmul.f32 %v1314_v22, %v1138_v44 }
 0x285   : > { %1453 = vst [vmem:[%s2698_s8 + $0x78] sm:$0xff] %v1421_v48 }
 0x286   : > { %1451 = vst [vmem:[%s2698_s8 + $0x68] sm:$0xff] %v1419_v26 }
 0x290   : > { %v1746_v57 = vpop.f32.mrb[32].mxu1 }
 0x291   : > { %v1424_v10 = vmul.f32 %v1746_v57, %v1339_v29  ;;  %v1151_v14 = vpop.f32.mrb[33].mxu1 }
 0x292   : > { %v1422_v19 = vmul.f32 %v1329_v52, %v1151_v14  ;;  %v1747_v54 = vpop.f32.mrb[34].mxu1 }
 0x293   : > { %1456 = vst [vmem:[%s2698_s8 + $0x90] sm:$0xff] %v1424_v10  ;;  %v1425_v23 = vmul.f32 %v1747_v54, %v1344_v56  ;;  %v1154_v33 = vpop.f32.mrb[35].mxu1 }
 0x294   : > { %1454 = vst [vmem:[%s2698_s8 + $0x80] sm:$0xff] %v1422_v19  ;;  %v1423_v8 = vmul.f32 %v1334_v63, %v1154_v33 }
 0x295   : > { %1457 = vst [vmem:[%s2698_s8 + $0x98] sm:$0xff] %v1425_v23 }
 0x296   : > { %1455 = vst [vmem:[%s2698_s8 + $0x88] sm:$0xff] %v1423_v8 }
 0x2a0   : > { %v1750_v18 = vpop.f32.mrb[36].mxu1 }
 0x2a1   : > { %v1428_v32 = vmul.f32 %v1750_v18, %v1359_v43  ;;  %v1167_v47 = vpop.f32.mrb[37].mxu1 }
 0x2a2   : > { %v1426_v2 = vmul.f32 %v1349_v6, %v1167_v47  ;;  %v1751_v42 = vpop.f32.mrb[38].mxu1 }
 0x2a3   : > { %1460 = vst [vmem:[%s2698_s8 + $0xb0] sm:$0xff] %v1428_v32  ;;  %v1429_v21 = vmul.f32 %v1751_v42, %v1364_v45  ;;  %v1170_v12 = vpop.f32.mrb[39].mxu1 }
 0x2a4   : > { %1458 = vst [vmem:[%s2698_s8 + $0xa0] sm:$0xff] %v1426_v2  ;;  %v1427_v35 = vmul.f32 %v1354_v39, %v1170_v12 }
 0x2a5   : > { %1461 = vst [vmem:[%s2698_s8 + $0xb8] sm:$0xff] %v1429_v21 }
 0x2a6   : > { %1459 = vst [vmem:[%s2698_s8 + $0xa8] sm:$0xff] %v1427_v35 }
 0x2a8   : > { %v1754_v20 = vpop.f32.mrb[40].mxu1 }
 0x2a9   : > { %v1432_v27 = vmul.f32 %v1754_v20, %v1379_v41  ;;  %v1183_v36 = vpop.f32.mrb[41].mxu1 }
 0x2aa   : > { %v1430_v9 = vmul.f32 %v1369_v51, %v1183_v36  ;;  %v1755_v60 = vpop.f32.mrb[42].mxu1 }
 0x2ab   : > { %1464 = vst [vmem:[%s2698_s8 + $0xd0] sm:$0xff] %v1432_v27  ;;  %v1433_v25 = vmul.f32 %v1755_v60, %v1384_v11  ;;  %v1186_v62 = vpop.f32.mrb[43].mxu1 }
 0x2ac   : > { %1462 = vst [vmem:[%s2698_s8 + $0xc0] sm:$0xff] %v1430_v9  ;;  %v1431_v49 = vmul.f32 %v1374_v58, %v1186_v62 }
 0x2ad   : > { %1465 = vst [vmem:[%s2698_s8 + $0xd8] sm:$0xff] %v1433_v25 }
 0x2ae   : > { %1463 = vst [vmem:[%s2698_s8 + $0xc8] sm:$0xff] %v1431_v49 }
 0x2b0   : > { %v1758_v13 = vpop.f32.mrb[44].mxu1 }
 0x2b1   : > { %v1436_v53 = vmul.f32 %v1758_v13, %v1399_v50  ;;  %v1199_v59 = vpop.f32.mrb[45].mxu1 }
 0x2b2   : > { %v1434_v3 = vmul.f32 %v1389_v61, %v1199_v59  ;;  %v1759_v4 = vpop.f32.mrb[46].mxu1 }
 0x2b3   : > { %1468 = vst [vmem:[%s2698_s8 + $0xf0] sm:$0xff] %v1436_v53  ;;  %v1437_v31 = vmul.f32 %v1759_v4, %v1404_v1  ;;  %v1202_v17 = vpop.f32.mrb[47].mxu1 }
 0x2b4   : > { %1466 = vst [vmem:[%s2698_s8 + $0xe0] sm:$0xff] %v1434_v3  ;;  %v1435_v5 = vmul.f32 %v1394_v46, %v1202_v17 }
 0x2b5   : > { %1469 = vst [vmem:[%s2698_s8 + $0xf8] sm:$0xff] %v1437_v31 }
 0x2b6   : > { %1467 = vst [vmem:[%s2698_s8 + $0xe8] sm:$0xff] %v1435_v5 }
 0x2b7   : > { %2089 = shalt.err (!%p2086_p13)
}
 0x2b8   : > { %s2090_s14 = scalar_lea.hbm %s2734_s30, 4096  ;;  %s2094_s25 = scalar_lea.hbm %s2798_s5, 36864 }
 0x2b9   : > { %p2091_p1 = scmp.ne.s32.totalorder %s2734_s30, %s2090_s14  ;;  %p2095_p10 = scmp.lt.u32.totalorder %s2734_s30, %s2798_s5 }
 0x2ba   : > { %p2096_p2 = scmp.lt.u32.totalorder %s2094_s25, %s2090_s14  ;;  %p2098_p6 = scmp.lt.u32.totalorder %s2090_s14, %s2734_s30 }
 0x2bb   : > { %p2092_p3 = pnand %p2091_p1, %p2808_p11 }
 0x2bc   : > { %p2097_p5 = por %p2096_p2, %p2095_p10 }
 0x2bd   : > { %p2093_p4 = pneg %p2092_p3 }
 0x2be   : > { %p2099_p12 = por %p2098_p6, %p2097_p5 }
 0x2c0   : > { %p2100_p0 = pnand %p2099_p12, %p2093_p4 }
 0x2c2   : > { %2103 = shalt.err (!%p2100_p0)
}
 0x2c3   : > { %s2176_s10 = smov 128   ;;  %s2177_s20 = smov 8  }
 0x2c4   : > { %1780 = dma.vmem_to_hbm [thread:$0]  (%p2808_p11), %s2736_s9, 4096, %s2734_s30, %s2743_s29, %s2176_s10, %s2176_s10, %s2177_s20  }
 0x2c5 PF: > { %p1793_p7 = scmp.ge.s32.totalorder %s2168_s28, 2  ;;  %s1499_s22 = sand.u32 1, %s2144_s23  }
 0x2c6   : > { %p2809_p8 = scmp.ne.s32.totalorder %s2804_s18, 0  ;;  %s1500_s7 = scalar_lea.sflag [#allocation6], %s1499_s22 }
 0x2c8   : > { %p1789_p9 = pnand %p1793_p7, %p2809_p8 }
 0x2ca   : > { %2139 = dma.done.wait (!%p1789_p9), %s1500_s7, 4096  }
 0x2cb   : > { %2141 = vsyncadd (!%p1789_p9), %s1500_s7, 4294963200  ;;  %p24_p11 = scmp.ge.s32.totalorder %s2249_s6, 11   ;;  %s2810_s23 = smov %s2148_s0 }
 0x2cc   : > { %s2811_s0 = smov %s2152_s24  ;;  %s2812_s24 = smov %s2276_s15 }
 0x2cd   : > { %s2813_s25 = smov %s2160_s26  ;;  %s2814_s26 = smov %s2164_s27 }
 0x2ce   : > { %s2815_s27 = smov %s2279_s16  ;;  %s2816_s28 = smov %s2249_s6 }
 0x2cf   :  { %26 = sbr.rel (!%p24_p11) target bundleno = 22 (0x16), region = 90 }
 0x2d6   :  { %1505 = vsyncpa [#allocation5], 1 }
 0x2d7   :  { %1507 = vsyncpa [#allocation5 + $0x1], 1 }
 0x2d8   :  { %1508 = vsyncpa [#allocation6], 1 }
 0x2d9   :  { %1510 = vsyncpa [#allocation6 + $0x1], 1 }

</bundles_post_ra>
